<compile_context>
chip_gen: v7x
topology: tpu7x:2x2x1
jax: 0.10.0
libtpu: 0.0.40
codegen_flags: <defaults>
</compile_context>

<pallas_src>
import functools

import jax
import jax.numpy as jnp
from jax import lax
from jax.experimental import pallas as pl
from jax.experimental.pallas import tpu as pltpu

SIGMA_INIT = -2.0
H_SIGMA_INIT = 0.0


# ---------------------------------------------------------------------------
# Pallas kernel: one batch tile, batch on lanes.
#   par_ref  : (16, F)   rows 0-1 = w3^T, row 2 = e0 (picks x[:,0]), rows 3-7 = 0
#                        row 8-9, col 0   = bias^T   = wsm^T @ (alpha0*tanh(w1))
#                        row 8-9, col 1   = w2[0,:]^T
#                        row 8-9, col 2:4 = (alpha1*wsm)^T
#                        row 8-9, col 4:6 = (alpha2*wsm)^T
#   x_ref    : (TB, F)   natural-layout batch tile (F = 25 features)
#   outt_ref : (2, TB)   logits^T tile (lane-dense stores)
# ---------------------------------------------------------------------------
def _nv_toy_kernel(par_ref, x_ref, outt_ref):
    par = par_ref[...]                            # (16, F) f32
    w3aug = par[0:8, :]                           # (8, F)  augmented w3^T
    sc = par[8:10, :]                             # (2, F)  epilogue constants
    bias_t = sc[:, 0:1]                           # (2, 1)
    w2_col = sc[:, 1:2]                           # (2, 1)
    wsm1_t = sc[:, 2:4]                           # (2, 2)  (alpha1*wsm)^T
    wsm2_t = sc[:, 4:6]                           # (2, 2)  (alpha2*wsm)^T

    # Single MXU contraction over the shared F(=25) minor axis (NT form):
    #   y = w3aug . x^T  -> (8, TB);  rows 0-1 = (x@w3)^T, row 2 = x[:, 0]^T.
    # Any relayout of x happens in VMEM (XLU), overlapped with the next tile DMA.
    y = lax.dot_general(
        w3aug, x_ref[...],
        dimension_numbers=(((1,), (1,)), ((), ())),
        preferred_element_type=jnp.float32)       # (8, TB)

    r3_t = jnp.tanh(y[0:2, :])                    # (2, TB)  tanh(x@w3)^T
    r2_t = jnp.tanh(w2_col * y[2:3, :])           # (2, TB)  tanh(x[:, :1]@w2)^T

    # logits^T = bias + (a1*wsm)^T @ r2^T + (a2*wsm)^T @ r3^T.
    # The 2x2 contractions are done as VPU FMAs (MXU would be 2/128 utilized).
    # TODO(synk): on v5e, if the f32 K=25 dot ever shows up on the critical
    # path once memory is fixed, consider 25 broadcast-FMAs instead (see review).
    outt_ref[...] = (
        bias_t
        + wsm1_t[:, 0:1] * r2_t[0:1, :] + wsm1_t[:, 1:2] * r2_t[1:2, :]
        + wsm2_t[:, 0:1] * r3_t[0:1, :] + wsm2_t[:, 1:2] * r3_t[1:2, :])


# ---------------------------------------------------------------------------
# Wrapper: param packing, tile selection, pallas_call.
# ---------------------------------------------------------------------------
def _round_up(v, m):
    return ((v + m - 1) // m) * m


def _pick_tb(batch, tb_max):
    """Batch tile: big enough to amortize pipeline overhead, >=2 tiles for v7x."""
    if batch <= 256:
        return batch                                   # single full block
    # At least 2 grid steps (both v7x TensorCores busy), tiles multiple of 128
    # so the (2, tb) output stores stay lane-dense / unmasked.
    return min(tb_max, _round_up(pl.cdiv(batch, 2), 128))


def _pack_params(w1, w2, w3, wsm, alpha, feat):
    """Single (16, feat) slab: augmented w3^T + hoisted epilogue constants."""
    w1 = w1.reshape(2).astype(jnp.float32)
    w2 = w2.reshape(1, 2).astype(jnp.float32)
    w3 = w3.reshape(feat, 2).astype(jnp.float32)
    wsm = wsm.reshape(2, 2).astype(jnp.float32)
    alpha = alpha.reshape(3).astype(jnp.float32)

    par = jnp.zeros((16, feat), jnp.float32)
    par = par.at[0:2, :].set(w3.T)                      # w3^T
    par = par.at[2, 0].set(1.0)                         # e0 -> extracts x[:, 0]

    bias_t = (wsm.T @ (alpha[0] * jnp.tanh(w1))).reshape(2, 1)
    par = par.at[8:10, 0:1].set(bias_t)
    par = par.at[8:10, 1:2].set(w2[0, :].reshape(2, 1))
    par = par.at[8:10, 2:4].set(alpha[1] * wsm.T)
    par = par.at[8:10, 4:6].set(alpha[2] * wsm.T)
    return par


def nv_toy_pallas(x, w1, w2, w3, wsm, alpha, *, tb_max=16384):
    """NVSearhToy forward hot path. x: (B, F=25) f32. Returns logits^T (2, B)."""
    B, F = x.shape
    assert w3.shape[0] == F, (w3.shape, F)
    x = x.astype(jnp.float32)                           # keep f32 (bf16 would
    # halve HBM traffic but change numerics vs the f32 reference).

    par = _pack_params(w1, w2, w3, wsm, alpha, F)       # (16, F)
    tb = _pick_tb(B, tb_max)

    return pl.pallas_call(
        _nv_toy_kernel,
        out_shape=jax.ShapeDtypeStruct((2, B), jnp.float32),
        grid=(pl.cdiv(B, tb),),
        in_specs=[
            pl.BlockSpec((16, F), lambda i: (0, 0)),    # params: fetched once
            pl.BlockSpec((tb, F), lambda i: (i, 0)),    # natural-layout x tile
        ],
        out_specs=pl.BlockSpec((2, tb), lambda i: (0, i)),
        compiler_params=pltpu.CompilerParams(
            dimension_semantics=("parallel",)),         # megacore on v7x
    )(par, x)


# ---------------------------------------------------------------------------
# Parameter init (mirrors NVSearhToy / NVSearchToyController).
# ---------------------------------------------------------------------------
def _xavier_uniform(key, shape):
    fan_out, fan_in = shape[0], shape[1]
    bound = (6.0 / (fan_in + fan_out)) ** 0.5
    return jax.random.uniform(key, shape, jnp.float32, -bound, bound)


def init_params(key):
    k2, k3, ksm, ka = jax.random.split(key, 4)
    return {
        "m1_m": jnp.ones((2,), jnp.float32),
        "m2_m": _xavier_uniform(k2, (1, 2)),
        "m3_m": _xavier_uniform(k3, (25, 2)),
        "msm_m": _xavier_uniform(ksm, (2, 2)),
        "m1_s": jnp.full((2,), SIGMA_INIT, jnp.float32),
        "m2_s": jnp.full((1, 2), SIGMA_INIT, jnp.float32),
        "m3_s": jnp.full((25, 2), SIGMA_INIT, jnp.float32),
        "msm_s": jnp.full((2, 2), SIGMA_INIT, jnp.float32),
        "alpha_logits": 0.001 * jax.random.normal(ka, (3,), jnp.float32),
    }


# ---------------------------------------------------------------------------
# Controller forward: softmax + rsample (cold-path glue) + Pallas kernel.
# ---------------------------------------------------------------------------
@functools.partial(jax.jit, static_argnames=("stochastic", "batch_major_out"))
def controller_forward(x, params, sample_key, stochastic=True,
                       batch_major_out=True):
    alpha = jax.nn.softmax(params["alpha_logits"], axis=-1)   # not pruned

    if stochastic:
        k1, k2, k3, k4 = jax.random.split(sample_key, 4)
        w1 = params["m1_m"] + jnp.exp(params["m1_s"]) * jax.random.normal(
            k1, params["m1_m"].shape, jnp.float32)
        w2 = params["m2_m"] + jnp.exp(params["m2_s"]) * jax.random.normal(
            k2, params["m2_m"].shape, jnp.float32)
        w3 = params["m3_m"] + jnp.exp(params["m3_s"]) * jax.random.normal(
            k3, params["m3_m"].shape, jnp.float32)
        wsm = params["msm_m"] + jnp.exp(params["msm_s"]) * jax.random.normal(
            k4, params["msm_m"].shape, jnp.float32)
    else:
        # Mirrors the PyTorch source exactly: the non-stochastic branch uses
        # model_sm_s (the log-sigma) as the final projection.
        # TODO(synk): confirm the upstream use of model_sm_s here is intentional.
        w1, w2, w3, wsm = (params["m1_m"], params["m2_m"],
                           params["m3_m"], params["msm_s"])

    logits_kb = nv_toy_pallas(x, w1, w2, w3, wsm, alpha)       # (2, B)
    # (B, 2) parity with the PyTorch module costs one small extra HBM pass;
    # hot-path callers can take the lane-major (2, B) form directly.
    return logits_kb.T if batch_major_out else logits_kb


# ---------------------------------------------------------------------------
# Pure-JAX reference for sanity checking.
# ---------------------------------------------------------------------------
def _reference(x, w1, w2, w3, wsm, alpha):
    r1 = jnp.tanh(w1)                                   # (2,)
    r2 = jnp.tanh(x[:, :1] @ w2)                        # (B, 2)
    r3 = jnp.tanh(x @ w3)                               # (B, 2)
    return (r1 * alpha[0] + r2 * alpha[1] + r3 * alpha[2]) @ wsm


if __name__ == "__main__":
    key = jax.random.PRNGKey(0)
    kx, kp, ks = jax.random.split(key, 3)

    B = 512                                             # small: 2 batch tiles of 256
    x = jax.random.normal(kx, (B, 25), jnp.float32)
    params = init_params(kp)

    logits = controller_forward(x, params, ks, stochastic=True)   # (B, 2)
    jax.block_until_ready(logits)
    assert logits.shape == (B, 2), logits.shape

    # Cross-check against the pure-JAX reference with identical sampled weights.
    k1, k2, k3, k4 = jax.random.split(ks, 4)
    w1 = params["m1_m"] + jnp.exp(params["m1_s"]) * jax.random.normal(k1, (2,))
    w2 = params["m2_m"] + jnp.exp(params["m2_s"]) * jax.random.normal(k2, (1, 2))
    w3 = params["m3_m"] + jnp.exp(params["m3_s"]) * jax.random.normal(k3, (25, 2))
    wsm = params["msm_m"] + jnp.exp(params["msm_s"]) * jax.random.normal(k4, (2, 2))
    alpha = jax.nn.softmax(params["alpha_logits"])
    ref = _reference(x, w1, w2, w3, wsm, alpha)
    assert jnp.allclose(logits, ref, atol=3e-5, rtol=2e-4), (logits, ref)

    # Lane-major output path (no final transpose), small odd batch, single block.
    x_small = jax.random.normal(kx, (40, 25), jnp.float32)
    logits_kb = controller_forward(x_small, params, ks, stochastic=True,
                                   batch_major_out=False)          # (2, 40)
    jax.block_until_ready(logits_kb)
    ref_small = _reference(x_small, w1, w2, w3, wsm, alpha)
    assert logits_kb.shape == (2, 40), logits_kb.shape
    assert jnp.allclose(logits_kb.T, ref_small, atol=3e-5, rtol=2e-4)

    print("KERNEL_OK")
</pallas_src>

<mosaic_0001>
module attributes {stable_mosaic.version = 11 : i64} {
  func.func @_nv_toy_kernel(%arg0: i32, %arg1: memref<16x25xf32, #tpu.memory_space<vmem>>, %arg2: memref<256x25xf32, #tpu.memory_space<vmem>>, %arg3: memref<2x256xf32, #tpu.memory_space<vmem>>) attributes {dimension_semantics = [#tpu.dimension_semantics<parallel>], iteration_bounds = array<i64: 2>, scalar_prefetch = 0 : i64, scratch_operands = 0 : i64, tpu.core_type = #tpu.core_type<tc>, window_params = [{pipeline_mode = #tpu.pipeline_mode<synchronous>, transform_indices = @transform_0, window_bounds = array<i64: 16, 25>}, {transform_indices = @transform_1, window_bounds = array<i64: 256, 25>}, {transform_indices = @transform_2, window_bounds = array<i64: 2, 256>}]} {
    %c0 = arith.constant 0 : index
    %c0_0 = arith.constant 0 : index
    %0 = vector.load %arg1[%c0, %c0_0] : memref<16x25xf32, #tpu.memory_space<vmem>>, vector<16x25xf32>
    %1 = vector.extract_strided_slice %0 {offsets = [0, 0], sizes = [8, 25], strides = [1, 1]} : vector<16x25xf32> to vector<8x25xf32>
    %2 = vector.extract_strided_slice %0 {offsets = [8, 0], sizes = [2, 25], strides = [1, 1]} : vector<16x25xf32> to vector<2x25xf32>
    %3 = vector.extract_strided_slice %2 {offsets = [0, 0], sizes = [2, 1], strides = [1, 1]} : vector<2x25xf32> to vector<2x1xf32>
    %4 = vector.extract_strided_slice %2 {offsets = [0, 1], sizes = [2, 1], strides = [1, 1]} : vector<2x25xf32> to vector<2x1xf32>
    %5 = vector.extract_strided_slice %2 {offsets = [0, 2], sizes = [2, 2], strides = [1, 1]} : vector<2x25xf32> to vector<2x2xf32>
    %6 = vector.extract_strided_slice %2 {offsets = [0, 4], sizes = [2, 2], strides = [1, 1]} : vector<2x25xf32> to vector<2x2xf32>
    %c0_1 = arith.constant 0 : index
    %c0_2 = arith.constant 0 : index
    %7 = vector.load %arg2[%c0_1, %c0_2] : memref<256x25xf32, #tpu.memory_space<vmem>>, vector<256x25xf32>
    %cst = arith.constant dense<0.000000e+00> : vector<8x256xf32>
    %8 = tpu.matmul %1, %7, %cst {dimension_numbers = #tpu.dot_dimension_numbers<[1], [1], [0], [0], [0, 0, 1, 0], [], []>} : vector<8x25xf32>, vector<256x25xf32>, vector<8x256xf32> -> vector<8x256xf32>
    %9 = vector.extract_strided_slice %8 {offsets = [0, 0], sizes = [2, 256], strides = [1, 1]} : vector<8x256xf32> to vector<2x256xf32>
    %10 = math.tanh %9 : vector<2x256xf32>
    %11 = vector.extract_strided_slice %8 {offsets = [2, 0], sizes = [1, 256], strides = [1, 1]} : vector<8x256xf32> to vector<1x256xf32>
    %12 = vector.broadcast %4 : vector<2x1xf32> to vector<2x256xf32>
    %13 = vector.broadcast %11 : vector<1x256xf32> to vector<2x256xf32>
    %14 = arith.mulf %12, %13 : vector<2x256xf32>
    %15 = math.tanh %14 : vector<2x256xf32>
    %16 = vector.extract_strided_slice %5 {offsets = [0, 0], sizes = [2, 1], strides = [1, 1]} : vector<2x2xf32> to vector<2x1xf32>
    %17 = vector.extract_strided_slice %15 {offsets = [0, 0], sizes = [1, 256], strides = [1, 1]} : vector<2x256xf32> to vector<1x256xf32>
    %18 = vector.broadcast %16 : vector<2x1xf32> to vector<2x256xf32>
    %19 = vector.broadcast %17 : vector<1x256xf32> to vector<2x256xf32>
    %20 = arith.mulf %18, %19 : vector<2x256xf32>
    %21 = vector.broadcast %3 : vector<2x1xf32> to vector<2x256xf32>
    %22 = arith.addf %21, %20 : vector<2x256xf32>
    %23 = vector.extract_strided_slice %5 {offsets = [0, 1], sizes = [2, 1], strides = [1, 1]} : vector<2x2xf32> to vector<2x1xf32>
    %24 = vector.extract_strided_slice %15 {offsets = [1, 0], sizes = [1, 256], strides = [1, 1]} : vector<2x256xf32> to vector<1x256xf32>
    %25 = vector.broadcast %23 : vector<2x1xf32> to vector<2x256xf32>
    %26 = vector.broadcast %24 : vector<1x256xf32> to vector<2x256xf32>
    %27 = arith.mulf %25, %26 : vector<2x256xf32>
    %28 = arith.addf %22, %27 : vector<2x256xf32>
    %29 = vector.extract_strided_slice %6 {offsets = [0, 0], sizes = [2, 1], strides = [1, 1]} : vector<2x2xf32> to vector<2x1xf32>
    %30 = vector.extract_strided_slice %10 {offsets = [0, 0], sizes = [1, 256], strides = [1, 1]} : vector<2x256xf32> to vector<1x256xf32>
    %31 = vector.broadcast %29 : vector<2x1xf32> to vector<2x256xf32>
    %32 = vector.broadcast %30 : vector<1x256xf32> to vector<2x256xf32>
    %33 = arith.mulf %31, %32 : vector<2x256xf32>
    %34 = arith.addf %28, %33 : vector<2x256xf32>
    %35 = vector.extract_strided_slice %6 {offsets = [0, 1], sizes = [2, 1], strides = [1, 1]} : vector<2x2xf32> to vector<2x1xf32>
    %36 = vector.extract_strided_slice %10 {offsets = [1, 0], sizes = [1, 256], strides = [1, 1]} : vector<2x256xf32> to vector<1x256xf32>
    %37 = vector.broadcast %35 : vector<2x1xf32> to vector<2x256xf32>
    %38 = vector.broadcast %36 : vector<1x256xf32> to vector<2x256xf32>
    %39 = arith.mulf %37, %38 : vector<2x256xf32>
    %40 = arith.addf %34, %39 : vector<2x256xf32>
    %c0_3 = arith.constant 0 : index
    %c0_4 = arith.constant 0 : index
    %41 = vector.load %arg3[%c0_3, %c0_4] : memref<2x256xf32, #tpu.memory_space<vmem>>, vector<2x256xf32>
    tpu.vector_store %arg3[%c0_3, %c0_4], %40 {strides = array<i32>} : memref<2x256xf32, #tpu.memory_space<vmem>>, vector<2x256xf32>,
    return
  }
  func.func @transform_0(%arg0: i32) -> (i32, i32) {
    %c0_i32 = arith.constant 0 : i32
    %c0_i32_0 = arith.constant 0 : i32
    %c0_i32_1 = arith.constant 0 : i32
    return %c0_i32, %c0_i32_0 : i32, i32
  }
  func.func @transform_1(%arg0: i32) -> (i32, i32) {
    %c0_i32 = arith.constant 0 : i32
    %c0_i32_0 = arith.constant 0 : i32
    return %arg0, %c0_i32 : i32, i32
  }
  func.func @transform_2(%arg0: i32) -> (i32, i32) {
    %c0_i32 = arith.constant 0 : i32
    %c0_i32_0 = arith.constant 0 : i32
    return %c0_i32, %arg0 : i32, i32
  }
}

</mosaic_0001>

<bundles_post_ra>
// kernel: controller_forward.3
= control target key start
LH: loop header
LB: loop body
LE: loop exit
PB: predicated region body
PF: predicated region fallthrough
CT: control target
= control target key end

     0   :  { %7 = vsyncpa [#allocation3], 0  ;;  %s984_s0 = inlined_call_operand.vmem [shape: f32[16,25], index: 0, kind: input, shape index: {}]   ;;  %s985_s1 = inlined_call_operand.vmem [shape: f32[512,25], index: 1, kind: input, shape index: {}]   ;;  %s986_s2 = inlined_call_operand.hbm [shape: f32[2,512], index: 2, kind: output, shape index: {}]  }
   0x1   :  { %9 = vsyncpa [#allocation3 + $0x1], 0  ;;  %s797_s9 = smov 0   ;;  %s799_s10 = smov 0  }
   0x2   :  { %s801_s11 = smov 0   ;;  %s803_s12 = smov 0  }
   0x3 LB: > { %s818_s13 = sadd.s32 4294967295, %s773_s12   ;;  %s523_s14 = sadd.s32 4294967294, %s773_s12   ;;  %s773_s12 = sphi %s803_s12, %s994_s12   ;;  %s769_s11 = sphi %s801_s11, %s993_s11   ;;  %s765_s10 = sphi %s799_s10, %s992_s10   ;;  %s761_s9 = sphi %s797_s9, %s991_s9  }
   0x4   : > { %s822_s15 = sadd.s32 1, %s773_s12   ;;  %s69_s16 = sadd.s32 1, %s769_s11 }
   0x5   : > { %s66_s17 = ssub.s32 %s773_s12, %s822_s15  ;;  %p79_p0 = scmp.ne.s32.totalorder %s769_s11, %s765_s10 }
   0x6   : > { %p67_p1 = scmp.eq.s32.totalorder %s66_s17, 0  ;;  %p80_p2 = scmp.eq.s32.totalorder %s818_s13, 1 }
   0x7   : > { %p85_p3 = scmp.ne.s32.totalorder %s765_s10, %s761_s9  ;;  %p86_p4 = scmp.eq.s32.totalorder %s523_s14, 1 }
   0x8   : > { %s833_s18 = scalar_select %p67_p1, %s769_s11, %s69_s16  }
   0x9   : > { %p835_p5 = por %p80_p2, %p79_p0  ;;  %p839_p6 = por %p86_p4, %p85_p3 }
   0xa   : > { %p526_p7 = scmp.ge.s32.totalorder %s773_s12, 1  ;;  %p116_p8 = scmp.lt.s32.totalorder %s773_s12, 3 }
   0xc   : > { %p117_p9 = pnand %p526_p7, %p116_p8 }
   0xd   : > { %s528_s21 = sshll.u32 (!%p117_p9), %s818_s13, 5  ;;  %vm179_vm0 = vcmask (!%p117_p9), 203776   ;;  %v849_v0 = vld [vmem:[%s984_s0] sm:$0xff] (!%p117_p9)  ;;  %v146_v1 = vld [vmem:[%s984_s0 + $0x8] sm:$0xff] (!%p117_p9)  ;;  %v775_v2 = vmov (!%p117_p9), 1   ;;  %v776_v3 = vmov (!%p117_p9), 0   ;;  %v357_v57 = vlaneseq (!%p117_p9) }
   0xe   : > { %120 = sbr.rel (%p117_p9) target bundleno = 347 (0x15b), region = 28  ;;  %p139_p10 = scmp.lt.s32.totalorder (!%p117_p9), %s528_s21, 63  ;;  %602 = vmatprep.mubr.msk.f32.mxu0 (!%p117_p9), %vm179_vm0, %v849_v0  ;;  %697 = vset.pattern.permute.xlu0 (!%p117_p9), %v775_v2  ;;  %vm863_vm1 = vmpackc.low (!%p117_p9), %vm179_vm0, %vm179_vm0  ;;  %v777_v5 = vmov (!%p117_p9), 2   ;;  %v778_v9 = vmov (!%p117_p9), 3   ;;  %v779_v16 = vmov (!%p117_p9), 5   ;;  %v780_v19 = vmov (!%p117_p9), 4  }
   0xf   : > { %699 = vset.pattern.permute.xlu1 (!%p117_p9), %v776_v3  ;;  %354 = vperm.xlu0 (!%p117_p9), %697, %v146_v1   ;;  %v358_v58 = vshrl.u32 (!%p117_p9), %v357_v57, 7  ;;  %s135_s30 = sand.u32 (!%p117_p9), 1, %s765_s10   ;;  %s569_s4 = sshll.u32 (!%p117_p9), %s818_s13, 6 }
  0x10   : > { %384 = vperm.xlu1 (!%p117_p9), %699, %v146_v1   ;;  %s527_s3 = sshll.u32 (!%p117_p9), %s135_s30, 2  ;;  %s940_s14 = scalar_lea.hbm (!%p117_p9), %s986_s2, %s569_s4 }
  0x11   : > { %v359_v59 = vsub.s32 (!%p117_p9), 2, %v358_v58  ;;  %s137_s5 = scalar_lea.vmem (!%p117_p9), [#allocation2], %s527_s3  ;;  %s450_s16 = scalar_lea.sflag (!%p117_p9), [#allocation3], %s135_s30 }
  0x12   : > { %s464_s6 = sshll.u32 (!%p117_p9), %s137_s5, 4  ;;  %s781_s13 = smov (!%p117_p9), [#allocation2]   ;;  %s942_s6 = int_to_ptr.vmem [resolvable:$true] %s464_s6 }
  0x13   : > { %698 = vset.pattern.permute.xlu0 (!%p117_p9), %v777_v5  ;;  %s711_s17 = scalar_lea.vmem (!%p117_p9), %s942_s6, 64 }
  0x14   : > { %700 = vset.pattern.permute.xlu1 (!%p117_p9), %v778_v9  ;;  %370 = vperm.xlu0 (!%p117_p9), %698, %v146_v1   ;;  %p712_p11 = scmp.ne.s32.totalorder (!%p117_p9), %s942_s6, %s711_s17 }
  0x15   : > { %s996_s21 = smov (!%p139_p10, %s528_s21), 63  ;;  %390 = vperm.xlu1 %700, %v146_v1  }
  0x16   : > { %s529_s26 = sshll.u32 %s996_s21, 3  ;;  %p713_p12 = pnand %p712_p11, %p835_p5 }
  0x17   : > { %s859_s29 = scalar_lea.vmem %s985_s1, %s529_s26  ;;  %s715_s21 = sshll.u32 %s781_s13, 4  ;;  %s716_s21 = int_to_ptr.vmem [resolvable:$false] %s715_s21 }
  0x18   : > { %v163_v6 = vld [vmem:[%s859_s29 + $0x80] sm:$0xff]  ;;  %v164_v7 = vld [vmem:[%s859_s29 + $0x88] sm:$0xff]  ;;  %v165_v12 = vld [vmem:[%s859_s29 + $0x90] sm:$0xff]  ;;  %702 = vset.pattern.permute.xlu0 %v779_v16  ;;  %p714_p13 = pneg %p713_p12  ;;  %s717_s22 = scalar_lea.vmem %s716_s21, 128 }
  0x19   : > { %v147_v8 = vld [vmem:[%s859_s29] sm:$0xff]  ;;  %v604_v10 = vpack.c.bf16 %v164_v7, %v163_v6  ;;  %v148_v11 = vld [vmem:[%s859_s29 + $0x8] sm:$0xff]  ;;  %v166_v13 = vld [vmem:[%s859_s29 + $0x98] sm:$0xff]  ;;  %701 = vset.pattern.permute.xlu1 %v780_v19  ;;  %422 = vperm.xlu0 %702, %v146_v1   ;;  %p718_p0 = scmp.lt.s32.totalorder %s942_s6, %s716_s21  ;;  %p719_p1 = scmp.lt.s32.totalorder %s717_s22, %s711_s17 }
  0x1a   : > { %v607_v14 = vpack.c.bf16 %v148_v11, %v147_v8  ;;  %v610_v15 = vpack.c.bf16 %v166_v13, %v165_v12  ;;  %v149_v17 = vld [vmem:[%s859_s29 + $0x10] sm:$0xff]  ;;  %v150_v18 = vld [vmem:[%s859_s29 + $0x18] sm:$0xff]  ;;  %v167_v20 = vld [vmem:[%s859_s29 + $0xa0] sm:$0xff]  ;;  %406 = vperm.xlu1 %701, %v146_v1   ;;  %v375_v8 = vsub.s32 0, %v358_v58 }
  0x1b   : > { %606 = vmatprep.subr.msk.bf16.mxu0 %vm863_vm1, %v604_v10  ;;  %v168_v21 = vld [vmem:[%s859_s29 + $0xa8] sm:$0xff]  ;;  %v613_v22 = vpack.c.bf16 %v150_v18, %v149_v17  ;;  %v151_v24 = vld [vmem:[%s859_s29 + $0x20] sm:$0xff]  ;;  %v169_v26 = vld [vmem:[%s859_s29 + $0xb0] sm:$0xff]  ;;  %p720_p2 = por %p719_p1, %p718_p0 }
  0x1c   : > { %609 = vmatpush3.bf16.xpose.msk.msra.mxu0 %vm863_vm1, %v607_v14  ;;  %v616_v23 = vpack.c.bf16 %v168_v21, %v167_v20  ;;  %v152_v25 = vld [vmem:[%s859_s29 + $0x28] sm:$0xff]  ;;  %v170_v27 = vld [vmem:[%s859_s29 + $0xb8] sm:$0xff]  ;;  %v153_v30 = vld [vmem:[%s859_s29 + $0x30] sm:$0xff] }
  0x1d   : > { %612 = vmatprep.subr.msk.bf16.mxu0 %vm863_vm1, %v610_v15  ;;  %v619_v28 = vpack.c.bf16 %v152_v25, %v151_v24  ;;  %v622_v29 = vpack.c.bf16 %v170_v27, %v169_v26  ;;  %v154_v31 = vld [vmem:[%s859_s29 + $0x38] sm:$0xff]  ;;  %v171_v32 = vld [vmem:[%s859_s29 + $0xc0] sm:$0xff]  ;;  %v172_v33 = vld [vmem:[%s859_s29 + $0xc8] sm:$0xff]  ;;  %p721_p3 = pnand %p720_p2, %p714_p13 }
  0x1e   : > { %v625_v34 = vpack.c.bf16 %v154_v31, %v153_v30  ;;  %v628_v35 = vpack.c.bf16 %v172_v33, %v171_v32  ;;  %v155_v36 = vld [vmem:[%s859_s29 + $0x40] sm:$0xff]  ;;  %v156_v37 = vld [vmem:[%s859_s29 + $0x48] sm:$0xff]  ;;  %v173_v38 = vld [vmem:[%s859_s29 + $0xd0] sm:$0xff] }
  0x1f   : > { %v174_v39 = vld [vmem:[%s859_s29 + $0xd8] sm:$0xff]  ;;  %v631_v40 = vpack.c.bf16 %v156_v37, %v155_v36  ;;  %v157_v42 = vld [vmem:[%s859_s29 + $0x50] sm:$0xff]  ;;  %v175_v44 = vld [vmem:[%s859_s29 + $0xe0] sm:$0xff] }
  0x20   : > { %v634_v41 = vpack.c.bf16 %v174_v39, %v173_v38  ;;  %v158_v43 = vld [vmem:[%s859_s29 + $0x58] sm:$0xff]  ;;  %v176_v45 = vld [vmem:[%s859_s29 + $0xe8] sm:$0xff]  ;;  %v159_v48 = vld [vmem:[%s859_s29 + $0x60] sm:$0xff] }
  0x21   : > { %v637_v46 = vpack.c.bf16 %v158_v43, %v157_v42  ;;  %v640_v47 = vpack.c.bf16 %v176_v45, %v175_v44  ;;  %v160_v49 = vld [vmem:[%s859_s29 + $0x68] sm:$0xff]  ;;  %v177_v50 = vld [vmem:[%s859_s29 + $0xf0] sm:$0xff]  ;;  %v178_v51 = vld [vmem:[%s859_s29 + $0xf8] sm:$0xff] }
  0x22   : > { %v643_v52 = vpack.c.bf16 %v160_v49, %v159_v48  ;;  %v646_v53 = vpack.c.bf16 %v178_v51, %v177_v50  ;;  %v161_v54 = vld [vmem:[%s859_s29 + $0x70] sm:$0xff]  ;;  %v162_v55 = vld [vmem:[%s859_s29 + $0x78] sm:$0xff] }
  0x23   : > { %v649_v56 = vpack.c.bf16 %v162_v55, %v161_v54 }
  0x24   : > { %615 = vmatpush3.bf16.xpose.msk.msra.mxu0 %vm863_vm1, %v613_v22 }
  0x25   : > { %618 = vmatprep.subr.msk.bf16.mxu0 %vm863_vm1, %v616_v23 }
  0x2c   : > { %621 = vmatpush3.bf16.xpose.msk.msra.mxu0 %vm863_vm1, %v619_v28 }
  0x2d   : > { %624 = vmatprep.subr.msk.bf16.mxu0 %vm863_vm1, %v622_v29 }
  0x34   : > { %627 = vmatpush3.bf16.xpose.msk.msra.mxu0 %vm863_vm1, %v625_v34 }
  0x35   : > { %630 = vmatprep.subr.msk.bf16.mxu0 %vm863_vm1, %v628_v35 }
  0x3c   : > { %633 = vmatpush3.bf16.xpose.msk.msra.mxu0 %vm863_vm1, %v631_v40 }
  0x3d   : > { %636 = vmatprep.subr.msk.bf16.mxu0 %vm863_vm1, %v634_v41 }
  0x44   : > { %639 = vmatpush3.bf16.xpose.msk.msra.mxu0 %vm863_vm1, %v637_v46 }
  0x45   : > { %642 = vmatprep.subr.msk.bf16.mxu0 %vm863_vm1, %v640_v47 }
  0x4c   : > { %645 = vmatpush3.bf16.xpose.msk.msra.mxu0 %vm863_vm1, %v643_v52 }
  0x4d   : > { %648 = vmatprep.subr.msk.bf16.mxu0 %vm863_vm1, %v646_v53 }
  0x54   : > { %651 = vmatpush3.bf16.xpose.msk.msra.mxu0 %vm863_vm1, %v649_v56 }
  0x5b   : > { %603 = vmatmul.mubr.msk.f32.vlgmr.msra.gmra.mrb[0].mxu0 %vm179_vm0, %v849_v0  ;;  %v395_v0 = vsub.s32 1, %v358_v58 }
  0x8e   : > { %v355_v61 = vpop.permute.xlu0 %354 }
  0x8f   : > { %v385_v4 = vpop.permute.xlu1 %384 }
  0x93   : > { %v371_v10 = vpop.permute.xlu0 %370 }
  0x94   : > { %v391_v6 = vpop.permute.xlu1 %390 }
  0x98   : > { %v423_v26 = vpop.permute.xlu0 %422 }
  0x99   : > { %v407_v19 = vpop.permute.xlu1 %406 }
 0x12e   : > { %v345_v60 = vpop.f32.mrb[0].mxu0 }
 0x12f   : > { %v360_v62 = vrot.slane %v345_v60, %v359_v59  ;;  %v347_v63 = vpop.f32.mrb[1].mxu0  ;;  %703 = vtanh.f32 %v345_v60 }
 0x130   : > { %v364_v1 = vrot.slane %v347_v63, %v359_v59  ;;  %705 = vtanh.f32 %v347_v63 }
 0x131   : > { %v365_v2 = vmul.f32 %v360_v62, %v355_v61 }
 0x132   : > { %v366_v3 = vmul.f32 %v364_v1, %v355_v61 }
 0x133   : > { %707 = vtanh.f32 %v365_v2 }
 0x134   : > { %709 = vtanh.f32 %v366_v3 }
 0x139   : > { %v704_v5 = vpop.eup %703 }
 0x13a   : > { %v706_v7 = vpop.eup %705  ;;  %v412_v17 = vrot.slane %v704_v5, %v375_v8  ;;  %v428_v23 = vrot.slane %v704_v5, %v395_v0 }
 0x13b   : > { %v416_v20 = vrot.slane %v706_v7, %v375_v8  ;;  %v432_v27 = vrot.slane %v706_v7, %v395_v0 }
 0x13c   : > { %v417_v29 = vmul.f32 %v412_v17, %v407_v19  ;;  %v433_v33 = vmul.f32 %v428_v23, %v423_v26 }
 0x13d   : > { %v708_v9 = vpop.eup %707  ;;  %v418_v31 = vmul.f32 %v416_v20, %v407_v19  ;;  %v434_v35 = vmul.f32 %v432_v27, %v423_v26 }
 0x13e   : > { %v710_v11 = vpop.eup %709  ;;  %v396_v12 = vrot.slane %v708_v9, %v395_v0  ;;  %v376_v13 = vrot.slane %v708_v9, %v375_v8 }
 0x13f   : > { %v400_v14 = vrot.slane %v710_v11, %v395_v0  ;;  %v380_v15 = vrot.slane %v710_v11, %v375_v8 }
 0x140   : > { %v381_v16 = vmul.f32 %v376_v13, %v371_v10  ;;  %v401_v21 = vmul.f32 %v396_v12, %v391_v6 }
 0x141   : > { %v382_v18 = vmul.f32 %v380_v15, %v371_v10  ;;  %v402_v24 = vmul.f32 %v400_v14, %v391_v6 }
 0x142   : > { %v387_v22 = vadd.f32 %v385_v4, %v381_v16 }
 0x143   : > { %v388_v25 = vadd.f32 %v385_v4, %v382_v18 }
 0x144   : > { %v403_v28 = vadd.f32 %v401_v21, %v387_v22 }
 0x145   : > { %v404_v30 = vadd.f32 %v402_v24, %v388_v25 }
 0x146   : > { %v419_v32 = vadd.f32 %v417_v29, %v403_v28 }
 0x147   : > { %v420_v34 = vadd.f32 %v418_v31, %v404_v30 }
 0x148   : > { %v435_v36 = vadd.f32 %v433_v33, %v419_v32 }
 0x149   : > { %v436_v37 = vadd.f32 %v434_v35, %v420_v34 }
 0x14b   : > { %v439_v38 = vcombine.low %v435_v36, %v436_v37 }
 0x14d   : > { %563 = vst.sshfl [vmem:[%s137_s5] sm:$0x33 pattern:$0x76325410] %v439_v38 }
 0x14e   : > { %724 = shalt.err (!%p721_p3)
}
 0x14f   : > { %s725_s23 = scalar_lea.hbm %s940_s14, 64  ;;  %s729_s26 = scalar_lea.hbm %s986_s2, 128 }
 0x150   : > { %p726_p4 = scmp.ne.s32.totalorder %s940_s14, %s725_s23  ;;  %p730_p9 = scmp.lt.u32.totalorder %s940_s14, %s986_s2 }
 0x151   : > { %p731_p10 = scmp.lt.u32.totalorder %s729_s26, %s725_s23  ;;  %p733_p12 = scmp.lt.u32.totalorder %s725_s23, %s940_s14 }
 0x152   : > { %p727_p7 = pnand %p726_p4, %p835_p5 }
 0x153   : > { %p732_p11 = por %p731_p10, %p730_p9 }
 0x154   : > { %p728_p8 = pneg %p727_p7 }
 0x155   : > { %p734_p13 = por %p733_p12, %p732_p11 }
 0x157   : > { %p735_p0 = pnand %p734_p13, %p728_p8 }
 0x159   : > { %738 = shalt.err (!%p735_p0)
}
 0x15a   : > { %652 = dma.vmem_to_hbm [thread:$0]  (%p835_p5), %s942_s6, 64, %s940_s14, %s450_s16  }
 0x15b PF: > { %p658_p1 = scmp.ge.s32.totalorder %s773_s12, 2  ;;  %s476_s29 = sand.u32 1, %s761_s9  }
 0x15c   : > { %s477_s30 = scalar_lea.sflag [#allocation3], %s476_s29 }
 0x15d   : > { %p655_p2 = pnand %p658_p1, %p839_p6 }
 0x15f   : > { %756 = dma.done.wait (!%p655_p2), %s477_s30, 64  }
 0x160   : > { %758 = vsyncadd (!%p655_p2), %s477_s30, 4294967232  ;;  %p12_p3 = scmp.ge.s32.totalorder %s822_s15, 4   ;;  %s991_s9 = smov %s765_s10 }
 0x161   : > { %s992_s10 = smov %s769_s11  ;;  %s993_s11 = smov %s833_s18 }
 0x162   : > { %s994_s12 = smov %s822_s15  ;;  %14 = sbr.rel (!%p12_p3) target bundleno = 3 (0x3), region = 63 }
 0x169   :  { %482 = vsyncpa [#allocation3], 1 }
 0x16a   :  { %484 = vsyncpa [#allocation3 + $0x1], 1 }

</bundles_post_ra>
